<compile_context>
chip_gen: v7x
topology: tpu7x:2x2x1
jax: 0.10.0
libtpu: 0.0.40
codegen_flags: <defaults>
</compile_context>

<pallas_src>
import jax
import jax.numpy as jnp
from jax.experimental import pallas as pl
from jax.experimental.pallas import tpu as pltpu


def group_enhance_kernel(x_ref, w_ref, b_ref, o_ref):
    # x_ref: (T, C, L) — T independent (batch, group) rows.
    x32 = x_ref[...].astype(jnp.float32)                       # (T, C, L) f32
    l = x32.shape[-1]

    # AdaptiveAvgPool1d(1): per-channel mean over L.
    mean_c = jnp.mean(x32, axis=2, keepdims=True)              # (T, C, 1)

    # dot = sum over channels of (x * avg_pool(x)).
    dot = jnp.sum(x32 * mean_c, axis=1, keepdims=True)         # (T, 1, L)

    # Per-group normalization over L (torch.std default: unbiased, ddof=1).
    mu = jnp.mean(dot, axis=2, keepdims=True)                  # (T, 1, 1)
    cent = dot - mu                                            # (T, 1, L)
    var = jnp.sum(cent * cent, axis=2, keepdims=True) * (1.0 / (l - 1))
    std = jnp.sqrt(var) + 1e-5                                 # (T, 1, 1)
    inv_std = 1.0 / std                                        # tiny (T,1,1) divide
    norm = cent * inv_std                                      # (T, 1, L)

    # Per-row affine + sigmoid gate, broadcast over channels.
    gate = jax.nn.sigmoid(norm * w_ref[...] + b_ref[...])      # (T, 1, L) f32

    # Final scale in the native dtype (avoids an extra full-block f32 pass
    # when x is bf16; for f32 inputs the casts are no-ops).
    xn = x_ref[...]
    o_ref[...] = (xn * gate.astype(xn.dtype)).astype(o_ref.dtype)


def group_enhance(x, weight, bias, groups=5, *,
                  pipeline_bytes=16 * 1024 * 1024,
                  vmem_limit_bytes=48 * 1024 * 1024,
                  target_steps=8):
    """x: (B, F, L); weight/bias: (1, groups, 1). Returns (B, F, L).

    pipeline_bytes: total VMEM budget for the pipelined blocks (in + out
    double-buffered + f32 temporaries + weight/bias).  The 16 MiB / 48 MiB
    defaults are safe on v7x (64 MiB VMEM); on v5e/v6e (128 MiB VMEM) both
    can be raised for very large B*G.
    """
    b, f, l = x.shape
    assert f % groups == 0, "F must be divisible by groups"
    assert l > 1, "L must be > 1 (unbiased std divides by L - 1)"
    c = f // groups
    bg = b * groups

    xg = x.reshape(bg, c, l)
    itemsize = jnp.dtype(x.dtype).itemsize

    # ---- Tile sizing -------------------------------------------------------
    # Per-row VMEM footprint, with the last two dims padded to the (8, 128)
    # vreg tiling:
    #   * input + output blocks, double-buffered, at the I/O dtype,
    #   * ~2 full-row f32 temporaries live inside the kernel body,
    #   * weight + bias (each (1,1) pads to an (8,128) f32 tile per row),
    #     counted double-buffered to be conservative.
    c_pad = -(-c // 8) * 8
    l_pad = -(-l // 128) * 128
    row_io_bytes = c_pad * l_pad * itemsize
    row_f32_bytes = c_pad * l_pad * 4
    row_wb_bytes = 2 * (8 * 128 * 4)
    per_row = 2 * 2 * row_io_bytes + 2 * row_f32_bytes + 2 * row_wb_bytes
    t_cap = max(1, pipeline_bytes // per_row)
    t_cap = min(t_cap, bg)

    # Aim for at least `target_steps` grid steps (>= 4 per TensorCore on v7x)
    # so double-buffering reaches steady state; never exceed the VMEM cap.
    steps = max(pl.cdiv(bg, t_cap), min(target_steps, bg))
    t = pl.cdiv(bg, steps)                      # t <= t_cap by construction

    # Snap T to a multiple of `groups` when possible so every block starts on
    # a group boundary; then one periodic (T,1,1) weight/bias block can stay
    # resident across the whole grid (constant index_map, no per-step DMA).
    if t >= groups:
        t = (t // groups) * groups

    grid = (pl.cdiv(bg, t),)                    # partial last block is clipped

    # ---- Weight / bias blocks ----------------------------------------------
    w_flat = weight.reshape(groups).astype(jnp.float32)
    b_flat = bias.reshape(groups).astype(jnp.float32)
    if t % groups == 0:
        # Resident: a single periodic (T,1,1) pattern reused every grid step.
        reps = t // groups
        w_arr = jnp.tile(w_flat, reps).reshape(t, 1, 1)
        b_arr = jnp.tile(b_flat, reps).reshape(t, 1, 1)
        w_spec = pl.BlockSpec((t, 1, 1), lambda i: (0, 0, 0))
        b_spec = pl.BlockSpec((t, 1, 1), lambda i: (0, 0, 0))
    else:
        # Streamed: per-(batch, group) rows, one (T,1,1) block per grid step.
        w_arr = jnp.broadcast_to(w_flat.reshape(1, groups), (b, groups)).reshape(bg, 1, 1)
        b_arr = jnp.broadcast_to(b_flat.reshape(1, groups), (b, groups)).reshape(bg, 1, 1)
        w_spec = pl.BlockSpec((t, 1, 1), lambda i: (i, 0, 0))
        b_spec = pl.BlockSpec((t, 1, 1), lambda i: (i, 0, 0))

    out = pl.pallas_call(
        group_enhance_kernel,
        out_shape=jax.ShapeDtypeStruct((bg, c, l), x.dtype),
        grid=grid,
        in_specs=[
            pl.BlockSpec((t, c, l), lambda i: (i, 0, 0)),
            w_spec,
            b_spec,
        ],
        out_specs=pl.BlockSpec((t, c, l), lambda i: (i, 0, 0)),
        compiler_params=pltpu.CompilerParams(
            dimension_semantics=("parallel",),
            vmem_limit_bytes=vmem_limit_bytes,
        ),
    )(xg, w_arr, b_arr)
    return out.reshape(b, f, l)


def ref_group_enhance(x, weight, bias, groups=5):
    """Pure-JAX reference mirroring the PyTorch forward exactly."""
    b, f, l = x.shape
    c = f // groups
    xg = x.reshape(b * groups, c, l)
    dot = (xg * xg.mean(axis=2, keepdims=True)).sum(axis=1, keepdims=True)
    norm = dot.reshape(b * groups, l)
    norm = norm - norm.mean(axis=1, keepdims=True)
    std = jnp.std(norm, axis=1, keepdims=True, ddof=1) + 1e-5
    norm = norm / std
    norm = norm.reshape(b, groups, l) * weight + bias
    gate = jax.nn.sigmoid(norm).reshape(b * groups, 1, l)
    return (xg * gate).reshape(b, f, l)


if __name__ == "__main__":
    key = jax.random.PRNGKey(0)
    kx1, kx2, kw, kb = jax.random.split(key, 4)

    groups = 5
    # PyTorch __init__ uses zeros/ones; small random values here so the
    # normalization + affine path is actually exercised.
    weight = 0.1 * jax.random.normal(kw, (1, groups, 1), dtype=jnp.float32)
    bias = 1.0 + 0.1 * jax.random.normal(kb, (1, groups, 1), dtype=jnp.float32)

    # Case 1: small B*G=20 -> T < groups, streamed w/b + partial last block.
    b1, c1, l1 = 4, 8, 256                      # F = 40
    x1 = jax.random.normal(kx1, (b1, groups * c1, l1), dtype=jnp.float32)
    out1 = jax.block_until_ready(group_enhance(x1, weight, bias, groups=groups))
    ref1 = ref_group_enhance(x1, weight, bias, groups=groups)
    assert out1.shape == x1.shape
    assert jnp.allclose(out1, ref1, atol=1e-4, rtol=1e-4), float(
        jnp.max(jnp.abs(out1 - ref1)))

    # Case 2: B*G=80 -> T snaps to a multiple of groups, resident w/b block.
    b2, c2, l2 = 16, 8, 256
    x2 = jax.random.normal(kx2, (b2, groups * c2, l2), dtype=jnp.float32)
    out2 = jax.block_until_ready(group_enhance(x2, weight, bias, groups=groups))
    ref2 = ref_group_enhance(x2, weight, bias, groups=groups)
    assert out2.shape == x2.shape
    assert jnp.allclose(out2, ref2, atol=1e-4, rtol=1e-4), float(
        jnp.max(jnp.abs(out2 - ref2)))

    print("KERNEL_OK")
</pallas_src>

<mosaic_0001>
module attributes {stable_mosaic.version = 11 : i64} {
  func.func @group_enhance_kernel(%arg0: i32, %arg1: memref<3x8x256xf32, #tpu.memory_space<vmem>>, %arg2: memref<3x1x1xf32, #tpu.memory_space<vmem>>, %arg3: memref<3x1x1xf32, #tpu.memory_space<vmem>>, %arg4: memref<3x8x256xf32, #tpu.memory_space<vmem>>) attributes {dimension_semantics = [#tpu.dimension_semantics<parallel>], iteration_bounds = array<i64: 7>, scalar_prefetch = 0 : i64, scratch_operands = 0 : i64, tpu.core_type = #tpu.core_type<tc>, window_params = [{transform_indices = @transform_0, window_bounds = array<i64: 3, 8, 256>}, {transform_indices = @transform_1, window_bounds = array<i64: 3, 1, 1>}, {transform_indices = @transform_2, window_bounds = array<i64: 3, 1, 1>}, {transform_indices = @transform_3, window_bounds = array<i64: 3, 8, 256>}]} {
    %c0 = arith.constant 0 : index
    %c0_0 = arith.constant 0 : index
    %c0_1 = arith.constant 0 : index
    %0 = vector.load %arg1[%c0, %c0_0, %c0_1] : memref<3x8x256xf32, #tpu.memory_space<vmem>>, vector<3x8x256xf32>
    %cst = arith.constant dense<0.000000e+00> : vector<3x8xf32>
    %1 = vector.multi_reduction <add>, %0, %cst [2] : vector<3x8x256xf32> to vector<3x8xf32>
    %2 = vector.shape_cast %1 : vector<3x8xf32> to vector<3x8x1xf32>
    %cst_2 = arith.constant 2.560000e+02 : f32
    %3 = vector.broadcast %cst_2 : f32 to vector<3x8x1xf32>
    %4 = arith.divf %2, %3 : vector<3x8x1xf32>
    %5 = vector.broadcast %4 : vector<3x8x1xf32> to vector<3x8x256xf32>
    %6 = arith.mulf %0, %5 : vector<3x8x256xf32>
    %cst_3 = arith.constant dense<0.000000e+00> : vector<3x256xf32>
    %7 = vector.multi_reduction <add>, %6, %cst_3 [1] : vector<3x8x256xf32> to vector<3x256xf32>
    %8 = vector.shape_cast %7 : vector<3x256xf32> to vector<3x1x256xf32>
    %cst_4 = arith.constant dense<0.000000e+00> : vector<3x1xf32>
    %9 = vector.multi_reduction <add>, %8, %cst_4 [2] : vector<3x1x256xf32> to vector<3x1xf32>
    %10 = vector.shape_cast %9 : vector<3x1xf32> to vector<3x1x1xf32>
    %cst_5 = arith.constant 2.560000e+02 : f32
    %11 = vector.broadcast %cst_5 : f32 to vector<3x1x1xf32>
    %12 = arith.divf %10, %11 : vector<3x1x1xf32>
    %13 = vector.broadcast %12 : vector<3x1x1xf32> to vector<3x1x256xf32>
    %14 = arith.subf %8, %13 : vector<3x1x256xf32>
    %15 = arith.mulf %14, %14 : vector<3x1x256xf32>
    %cst_6 = arith.constant dense<0.000000e+00> : vector<3x1xf32>
    %16 = vector.multi_reduction <add>, %15, %cst_6 [2] : vector<3x1x256xf32> to vector<3x1xf32>
    %17 = vector.shape_cast %16 : vector<3x1xf32> to vector<3x1x1xf32>
    %cst_7 = arith.constant 0.00392156886 : f32
    %18 = vector.broadcast %cst_7 : f32 to vector<3x1x1xf32>
    %19 = arith.mulf %17, %18 : vector<3x1x1xf32>
    %20 = math.sqrt %19 : vector<3x1x1xf32>
    %cst_8 = arith.constant 9.99999974E-6 : f32
    %21 = vector.broadcast %cst_8 : f32 to vector<3x1x1xf32>
    %22 = arith.addf %20, %21 : vector<3x1x1xf32>
    %cst_9 = arith.constant 1.000000e+00 : f32
    %23 = vector.broadcast %cst_9 : f32 to vector<3x1x1xf32>
    %24 = arith.divf %23, %22 : vector<3x1x1xf32>
    %25 = vector.broadcast %24 : vector<3x1x1xf32> to vector<3x1x256xf32>
    %26 = arith.mulf %14, %25 : vector<3x1x256xf32>
    %c0_10 = arith.constant 0 : index
    %c0_11 = arith.constant 0 : index
    %c0_12 = arith.constant 0 : index
    %27 = vector.load %arg2[%c0_10, %c0_11, %c0_12] : memref<3x1x1xf32, #tpu.memory_space<vmem>>, vector<3x1x1xf32>
    %28 = vector.broadcast %27 : vector<3x1x1xf32> to vector<3x1x256xf32>
    %29 = arith.mulf %26, %28 : vector<3x1x256xf32>
    %c0_13 = arith.constant 0 : index
    %c0_14 = arith.constant 0 : index
    %c0_15 = arith.constant 0 : index
    %30 = vector.load %arg3[%c0_13, %c0_14, %c0_15] : memref<3x1x1xf32, #tpu.memory_space<vmem>>, vector<3x1x1xf32>
    %31 = vector.broadcast %30 : vector<3x1x1xf32> to vector<3x1x256xf32>
    %32 = arith.addf %29, %31 : vector<3x1x256xf32>
    %33 = arith.negf %32 : vector<3x1x256xf32>
    %34 = math.exp %33 : vector<3x1x256xf32>
    %cst_16 = arith.constant 1.000000e+00 : f32
    %35 = vector.broadcast %cst_16 : f32 to vector<3x1x256xf32>
    %36 = arith.addf %35, %34 : vector<3x1x256xf32>
    %37 = arith.divf %35, %36 : vector<3x1x256xf32>
    %c0_17 = arith.constant 0 : index
    %c0_18 = arith.constant 0 : index
    %c0_19 = arith.constant 0 : index
    %38 = vector.load %arg1[%c0_17, %c0_18, %c0_19] : memref<3x8x256xf32, #tpu.memory_space<vmem>>, vector<3x8x256xf32>
    %39 = vector.broadcast %37 : vector<3x1x256xf32> to vector<3x8x256xf32>
    %40 = arith.mulf %38, %39 : vector<3x8x256xf32>
    %c0_20 = arith.constant 0 : index
    %c0_21 = arith.constant 0 : index
    %c0_22 = arith.constant 0 : index
    %41 = vector.load %arg4[%c0_20, %c0_21, %c0_22] : memref<3x8x256xf32, #tpu.memory_space<vmem>>, vector<3x8x256xf32>
    tpu.vector_store %arg4[%c0_20, %c0_21, %c0_22], %40 {strides = array<i32>} : memref<3x8x256xf32, #tpu.memory_space<vmem>>, vector<3x8x256xf32>,
    return
  }
  func.func @transform_0(%arg0: i32) -> (i32, i32, i32) {
    %c0_i32 = arith.constant 0 : i32
    %c0_i32_0 = arith.constant 0 : i32
    %c0_i32_1 = arith.constant 0 : i32
    return %arg0, %c0_i32, %c0_i32_0 : i32, i32, i32
  }
  func.func @transform_1(%arg0: i32) -> (i32, i32, i32) {
    %c0_i32 = arith.constant 0 : i32
    %c0_i32_0 = arith.constant 0 : i32
    %c0_i32_1 = arith.constant 0 : i32
    return %arg0, %c0_i32, %c0_i32_0 : i32, i32, i32
  }
  func.func @transform_2(%arg0: i32) -> (i32, i32, i32) {
    %c0_i32 = arith.constant 0 : i32
    %c0_i32_0 = arith.constant 0 : i32
    %c0_i32_1 = arith.constant 0 : i32
    return %arg0, %c0_i32, %c0_i32_0 : i32, i32, i32
  }
  func.func @transform_3(%arg0: i32) -> (i32, i32, i32) {
    %c0_i32 = arith.constant 0 : i32
    %c0_i32_0 = arith.constant 0 : i32
    %c0_i32_1 = arith.constant 0 : i32
    return %arg0, %c0_i32, %c0_i32_0 : i32, i32, i32
  }
}

</mosaic_0001>

<bundles_post_ra>
// kernel: tpu_custom_call.1
= control target key start
LH: loop header
LB: loop body
LE: loop exit
PB: predicated region body
PF: predicated region fallthrough
CT: control target
= control target key end

     0   :  { %8 = vsyncpa [#allocation3], 0  ;;  %s1136_s0 = inlined_call_operand.hbm [shape: f32[20,8,256], index: 0, kind: input, shape index: {}]   ;;  %s1137_s1 = inlined_call_operand.vmem [shape: f32[20,1,1], index: 1, kind: input, shape index: {}]   ;;  %s1138_s2 = inlined_call_operand.vmem [shape: f32[20,1,1], index: 2, kind: input, shape index: {}]   ;;  %s1139_s3 = inlined_call_operand.hbm [shape: f32[20,8,256], index: 3, kind: output, shape index: {}]  }
   0x1   :  { %10 = vsyncpa [#allocation3 + $0x1], 0 }
   0x2   :  { %11 = vsyncpa [#allocation4], 0 }
   0x3   :  { %13 = vsyncpa [#allocation4 + $0x1], 0  ;;  %s894_s12 = smov 0   ;;  %s896_s13 = smov 0  }
   0x4   :  { %s898_s14 = smov 0   ;;  %s900_s15 = smov 0  }
   0x5 LB: > { %s915_s16 = sadd.s32 4294967295, %s865_s15   ;;  %s653_s17 = sadd.s32 4294967294, %s865_s15   ;;  %s865_s15 = sphi %s900_s15, %s1147_s15   ;;  %s861_s14 = sphi %s898_s14, %s1146_s14   ;;  %s857_s13 = sphi %s896_s13, %s1145_s13   ;;  %s853_s12 = sphi %s894_s12, %s1144_s12  }
   0x6   : > { %s919_s18 = sadd.s32 1, %s865_s15   ;;  %s26_s19 = sadd.s32 1, %s861_s14 }
   0x7   : > { %s23_s20 = ssub.s32 %s865_s15, %s919_s18  ;;  %p33_p0 = scmp.ne.s32.totalorder %s861_s14, %s857_s13 }
   0x8   : > { %p24_p1 = scmp.eq.s32.totalorder %s23_s20, 0  ;;  %p34_p2 = scmp.eq.s32.totalorder %s865_s15, 0 }
   0x9   : > { %p39_p3 = scmp.ne.s32.totalorder %s857_s13, %s853_s12  ;;  %p40_p4 = scmp.eq.s32.totalorder %s915_s16, 0 }
   0xa   : > { %s931_s21 = scalar_select %p24_p1, %s861_s14, %s26_s19  }
   0xb   : > { %p35_p5 = por %p34_p2, %p33_p0  ;;  %p933_p6 = por %p40_p4, %p39_p3 }
   0xc   : > { %p115_p7 = scmp.eq.s32.totalorder %s915_s16, 6  ;;  %p121_p8 = scmp.eq.s32.totalorder %s653_s17, 6 }
   0xd   : > { %p655_p11 = scmp.ge.s32.totalorder %s865_s15, 7 }
   0xe   : > { %p938_p9 = por %p115_p7, %p33_p0  ;;  %p942_p10 = por %p121_p8, %p39_p3 }
   0xf   : > { %137 = sbr.rel (%p655_p11) target bundleno = 57 (0x39), region = 16 }
  0x10   : > { %s1142_s24 = scalar_select %p942_p10, 1, 0 }
  0x16   : > { %140 = sbr.rel (!%p35_p5) target bundleno = 57 (0x39), region = 20  ;;  %s141_s25 = sand.u32 (%p35_p5), 1, %s861_s14  }
  0x17   : > { %s146_s26 = smul.u32 (%p35_p5), 3, %s865_s15  ;;  %s952_s4 = scalar_lea.sflag (%p35_p5), [#allocation3], %s141_s25 }
  0x18   : > { %s687_s27 = smul.u32 (%p35_p5), 48, %s141_s25 }
  0x19   : > { %s147_s28 = ssub.s32 (%p35_p5), 20, %s146_s26 }
  0x1a   : > { %p148_p12 = scmp.lt.s32.totalorder (%p35_p5), %s147_s28, 3  ;;  %s145_s5 = scalar_lea.vmem (%p35_p5), [#allocation2], %s687_s27 }
  0x1d   : > { %s1149_s28 = smov (!%p148_p12, %s147_s28), 3 }
  0x1e   : > { %s949_s29 = sshll.u32 %s1149_s28, 8 }
  0x1f   : > { %s153_s30 = ssub.s32 768, %s949_s29 }
  0x20   : > { %154 = vsyncadd %s952_s4, %s153_s30  ;;  %p658_p13 = scmp.ne.s32.totalorder %s949_s29, 0  ;;  %s685_s6 = smul.u32 768, %s865_s15 }
  0x21   : > { %s160_s7 = sshll.u32 %s145_s5, 4  ;;  %s775_s20 = scalar_lea.hbm %s1136_s0, 5120  ;;  %s962_s7 = int_to_ptr.vmem [resolvable:$true] %s160_s7 }
  0x22   : > { %s960_s10 = scalar_lea.hbm %s1136_s0, %s685_s6 }
  0x23   : > { %s771_s11 = scalar_lea.hbm %s960_s10, %s949_s29  ;;  %p776_p3 = scmp.lt.u32.totalorder %s960_s10, %s1136_s0 }
  0x24   : > { %p772_p0 = scmp.ne.s32.totalorder %s960_s10, %s771_s11  ;;  %p777_p4 = scmp.lt.u32.totalorder %s775_s20, %s771_s11 }
  0x25   : > { %p779_p7 = scmp.lt.u32.totalorder %s771_s11, %s960_s10 }
  0x26   : > { %p773_p1 = pnand %p772_p0, %p658_p13  ;;  %p778_p5 = por %p777_p4, %p776_p3 }
  0x28   : > { %p774_p2 = pneg %p773_p1  ;;  %p780_p8 = por %p779_p7, %p778_p5 }
  0x2a   : > { %p781_p11 = pnand %p780_p8, %p774_p2 }
  0x2c   : > { %784 = shalt.err (!%p781_p11)
}
  0x2d   : > { %s785_s27 = scalar_lea.vmem %s962_s7, %s949_s29  ;;  %s867_s28 = smov [#allocation2]  }
  0x2e   : > { %p786_p12 = scmp.ne.s32.totalorder %s962_s7, %s785_s27  ;;  %s789_s30 = sshll.u32 %s867_s28, 4  ;;  %s790_s30 = int_to_ptr.vmem [resolvable:$false] %s789_s30 }
  0x2f   : > { %s791_s5 = scalar_lea.vmem %s790_s30, 1536  ;;  %p792_p10 = scmp.lt.s32.totalorder %s962_s7, %s790_s30 }
  0x30   : > { %p787_p0 = pnand %p786_p12, %p658_p13  ;;  %p793_p3 = scmp.lt.s32.totalorder %s791_s5, %s785_s27 }
  0x32   : > { %p788_p1 = pneg %p787_p0  ;;  %p794_p4 = por %p793_p3, %p792_p10 }
  0x34   : > { %p795_p5 = pnand %p794_p4, %p788_p1 }
  0x36   : > { %798 = shalt.err (!%p795_p5)
}
  0x37   : > { %s868_s6 = smov 256   ;;  %s869_s8 = smov 16  }
  0x38   : > { %166 = dma.hbm_to_vmem [thread:$0]  (%p658_p13), %s960_s10, %s949_s29, %s962_s7, %s952_s4, %s868_s6, %s868_s6, %s869_s8  }
  0x39 PF: > { %p663_p2 = scmp.ge.s32.totalorder %s865_s15, 1  ;;  %p200_p7 = scmp.lt.s32.totalorder %s865_s15, 8 }
  0x3b   : > { %p201_p8 = pnand %p663_p2, %p200_p7 }
  0x3c   : > { %s992_s9 = sand.u32 (!%p201_p8), 1, %s857_s13  }
  0x3d   : > { %204 = sbr.rel (%p201_p8) target bundleno = 625 (0x271), region = 32  ;;  %s207_s17 = scalar_lea.sflag (!%p201_p8), [#allocation3], %s992_s9 }
  0x3e   : > { %s688_s11 = smul.u32 (!%p201_p8), 48, %s992_s9 }
  0x40   : > { %s210_s19 = scalar_lea.vmem (!%p201_p8), [#allocation2], %s688_s11 }
  0x44   : > { %844 = dma.done.wait (%p933_p6), %s207_s17, 768  }
  0x45   : > { %846 = vsyncadd (%p933_p6), %s207_s17, 4294966528  ;;  %v1002_v0 = vld [vmem:[%s210_s19 + $0x20] sm:$0xff]  ;;  %v1004_v1 = vld [vmem:[%s210_s19 + $0x28] sm:$0xff]  ;;  %v870_v60 = vmov 0   ;;  %s1051_s22 = smul.u32 3, %s915_s16  ;;  %s248_s27 = scalar_lea.vmem [#allocation5], %s688_s11 }
  0x46   : > { %v1006_v2 = vld [vmem:[%s210_s19] sm:$0xff]  ;;  %v299_v3 = vadd.f32 %v1004_v1, %v1002_v0  ;;  %v1010_v4 = vld [vmem:[%s210_s19 + $0x8] sm:$0xff]  ;;  %v1012_v5 = vld [vmem:[%s210_s19 + $0x10] sm:$0xff]  ;;  %733 = vset.pattern.permute.xlu1 %v870_v60  ;;  %734 = vset.pattern.permute.xlu0 %v870_v60  ;;  %s541_s28 = scalar_lea.sflag [#allocation4], %s992_s9 }
  0x47   : > { %v1014_v6 = vld [vmem:[%s210_s19 + $0x18] sm:$0xff]  ;;  %v293_v7 = vadd.f32 %v1010_v4, %v1006_v2  ;;  %p260_p6 = scmp.lt.s32.totalorder %s1051_s22, 19  ;;  %s549_s30 = ssub.s32 (%p938_p9), 20, %s1051_s22 }
  0x48   : > { %300 = vadd.xlane.f32.xlu1 %v299_v3  ;;  %v296_v8 = vadd.f32 %v1014_v6, %v1012_v5  ;;  %p550_p10 = scmp.lt.s32.totalorder (%p938_p9), %s549_s30, 3 }
  0x49   : > { %294 = vadd.xlane.f32.xlu0 %v293_v7  ;;  %s261_s29 = scalar_select %p260_p6, %s1051_s22, 19 }
  0x4b   : > { %s262_s10 = scalar_lea.vmem %s1137_s1, %s261_s29  ;;  %s275_s26 = scalar_lea.vmem %s1138_s2, %s261_s29 }
  0x4d   : > { %297 = vadd.xlane.f32.xlu0 %v296_v8 }
  0xd5   : > { %v301_v9 = vpop.xlane.xlu1 %300 }
  0xd6   : > { %v305_v10 = vmul.f32 0.00390625, %v301_v9  ;;  %v295_v11 = vpop.xlane.xlu0 %294 }
  0xd7   : > { %v303_v12 = vmul.f32 0.00390625, %v295_v11 }
  0xd8   : > { %v310_v13 = vmul.f32 %v305_v10, %v1002_v0  ;;  %v311_v14 = vmul.f32 %v305_v10, %v1004_v1 }
  0xd9   : > { %v306_v15 = vmul.f32 %v303_v12, %v1006_v2  ;;  %v307_v16 = vmul.f32 %v303_v12, %v1010_v4 }
  0xda   : > { %v336_v17 = vrot.slane %v310_v13, 4  ;;  %v342_v18 = vrot.slane %v311_v14, 4  ;;  %v298_v19 = vpop.xlane.xlu0 %297 }
  0xdb   : > { %v312_v20 = vrot.slane %v306_v15, 4  ;;  %v318_v21 = vrot.slane %v307_v16, 4  ;;  %v304_v22 = vmul.f32 0.00390625, %v298_v19 }
  0xdc   : > { %v337_v23 = vadd.f32 %v336_v17, %v310_v13  ;;  %v343_v24 = vadd.f32 %v342_v18, %v311_v14 }
  0xdd   : > { %v313_v25 = vadd.f32 %v312_v20, %v306_v15  ;;  %v319_v26 = vadd.f32 %v318_v21, %v307_v16  ;;  %v308_v27 = vmul.f32 %v304_v22, %v1012_v5  ;;  %v309_v28 = vmul.f32 %v304_v22, %v1014_v6 }
  0xde   : > { %v338_v29 = vrot.slane %v337_v23, 2  ;;  %v344_v30 = vrot.slane %v343_v24, 2 }
  0xdf   : > { %v314_v31 = vrot.slane %v313_v25, 2  ;;  %v320_v32 = vrot.slane %v319_v26, 2  ;;  %v324_v33 = vrot.slane %v308_v27, 4  ;;  %v330_v34 = vrot.slane %v309_v28, 4 }
  0xe0   : > { %v339_v35 = vadd.f32 %v338_v29, %v337_v23  ;;  %v345_v36 = vadd.f32 %v344_v30, %v343_v24  ;;  %v420_v24 = vld [vmem:[%s262_s10] sm:$0x1]  ;;  %v458_v29 = vld [vmem:[%s275_s26 + $0x2] sm:$0x1] }
  0xe1   : > { %v325_v37 = vadd.f32 %v324_v33, %v308_v27  ;;  %v331_v38 = vadd.f32 %v330_v34, %v309_v28  ;;  %v315_v39 = vadd.f32 %v314_v31, %v313_v25  ;;  %v321_v40 = vadd.f32 %v320_v32, %v319_v26  ;;  %v422_v25 = vld [vmem:[%s262_s10 + $0x2] sm:$0x1]  ;;  %v421_v26 = vld [vmem:[%s262_s10 + $0x1] sm:$0x1]  ;;  %v456_v27 = vld [vmem:[%s275_s26] sm:$0x1] }
  0xe2   : > { %v340_v41 = vrot.slane %v339_v35, 1  ;;  %v346_v42 = vrot.slane %v345_v36, 1  ;;  %v457_v28 = vld [vmem:[%s275_s26 + $0x1] sm:$0x1] }
  0xe3   : > { %v326_v43 = vrot.slane %v325_v37, 2  ;;  %v332_v44 = vrot.slane %v331_v38, 2  ;;  %v316_v45 = vrot.slane %v315_v39, 1  ;;  %v322_v46 = vrot.slane %v321_v40, 1 }
  0xe4   : > { %v341_v51 = vadd.f32 %v340_v41, %v339_v35  ;;  %v347_v53 = vadd.f32 %v346_v42, %v345_v36 }
  0xe5   : > { %v317_v47 = vadd.f32 %v316_v45, %v315_v39  ;;  %v323_v48 = vadd.f32 %v322_v46, %v321_v40  ;;  %v327_v49 = vadd.f32 %v326_v43, %v325_v37  ;;  %v333_v50 = vadd.f32 %v332_v44, %v331_v38 }
  0xe6   : > { %v354_v58 = vadd.f32 %v347_v53, %v341_v51  ;;  %v428_v45 = vlaneseq }
  0xe7   : > { %v348_v52 = vadd.f32 %v323_v48, %v317_v47  ;;  %v328_v54 = vrot.slane %v327_v49, 1  ;;  %v334_v55 = vrot.slane %v333_v50, 1 }
  0xe9   : > { %349 = vadd.xlane.f32.xlu1 %v348_v52  ;;  %v329_v56 = vadd.f32 %v328_v54, %v327_v49  ;;  %v335_v57 = vadd.f32 %v334_v55, %v333_v50 }
  0xeb   : > { %v351_v59 = vadd.f32 %v335_v57, %v329_v56 }
  0xed   : > { %355 = vadd.xlane.f32.xlu1 %v354_v58  ;;  %352 = vadd.xlane.f32.xlu0 %v351_v59  ;;  %v429_v58 = vshrl.u32 %v428_v45, 7 }
  0xef   : > { %v430_v59 = vsub.s32 0, %v429_v58 }
 0x176   : > { %v350_v61 = vpop.xlane.xlu1 %349 }
 0x177   : > { %v357_v62 = vmul.f32 0.00390625, %v350_v61 }
 0x179   : > { %v1026_v63 = vsub.f32 %v317_v47, %v357_v62  ;;  %v1028_v3 = vsub.f32 %v323_v48, %v357_v62 }
 0x17a   : > { %v356_v7 = vpop.xlane.xlu1 %355  ;;  %v353_v8 = vpop.xlane.xlu0 %352 }
 0x17b   : > { %v359_v9 = vmul.f32 0.00390625, %v356_v7  ;;  %v358_v10 = vmul.f32 0.00390625, %v353_v8  ;;  %v366_v11 = vmul.f32 %v1026_v63, %v1026_v63  ;;  %v367_v12 = vmul.f32 %v1028_v3, %v1028_v3 }
 0x17d   : > { %v1034_v13 = vsub.f32 %v341_v51, %v359_v9  ;;  %v1036_v14 = vsub.f32 %v347_v53, %v359_v9  ;;  %v1038_v15 = vsub.f32 %v329_v56, %v358_v10  ;;  %v1040_v16 = vsub.f32 %v335_v57, %v358_v10 }
 0x17e   : > { %v372_v17 = vadd.f32 %v367_v12, %v366_v11 }
 0x17f   : > { %v370_v18 = vmul.f32 %v1034_v13, %v1034_v13  ;;  %v371_v19 = vmul.f32 %v1036_v14, %v1036_v14  ;;  %v368_v20 = vmul.f32 %v1038_v15, %v1038_v15  ;;  %v369_v21 = vmul.f32 %v1040_v16, %v1040_v16 }
 0x180   : > { %373 = vadd.xlane.f32.xlu0 %v372_v17 }
 0x181   : > { %v378_v22 = vadd.f32 %v371_v19, %v370_v18  ;;  %v375_v23 = vadd.f32 %v369_v21, %v368_v20 }
 0x183   : > { %376 = vadd.xlane.f32.xlu1 %v375_v23 }
 0x184   : > { %379 = vadd.xlane.f32.xlu0 %v378_v22 }
 0x194   : > { %425 = vperm.xlu1 %733, %v420_v24  }
 0x198   : > { %443 = vperm.xlu1 %733, %v422_v25  }
 0x19a   : > { %434 = vperm.xlu0 %734, %v421_v26  }
 0x19c   : > { %461 = vperm.xlu1 %733, %v456_v27  }
 0x1a0   : > { %470 = vperm.xlu1 %733, %v457_v28  }
 0x1a4   : > { %479 = vperm.xlu1 %733, %v458_v29  }
 0x20d   : > { %v374_v30 = vpop.xlane.xlu0 %373 }
 0x20e   : > { %v381_v31 = vmul.f32 0.003921569, %v374_v30 }
 0x210   : > { %735 = vrsqrt.f32 %v381_v31  ;;  %v377_v32 = vpop.xlane.xlu1 %376  ;;  %vm386_vm0 = vcmp.eq.f32.partialorder %v381_v31, inf  ;;  %v389_v39 = vand.u32 2147483648, %v381_v31  ;;  %vm388_vm1 = vcmp.eq.f32.partialorder %v381_v31, 0.0 }
 0x211   : > { %v382_v33 = vmul.f32 0.003921569, %v377_v32  ;;  %v380_v34 = vpop.xlane.xlu0 %379 }
 0x212   : > { %v383_v35 = vmul.f32 0.003921569, %v380_v34 }
 0x213   : > { %737 = vrsqrt.f32 %v382_v33  ;;  %vm393_vm2 = vcmp.eq.f32.partialorder %v382_v33, inf  ;;  %v396_v47 = vand.u32 2147483648, %v382_v33  ;;  %vm395_vm4 = vcmp.eq.f32.partialorder %v382_v33, 0.0 }
 0x214   : > { %739 = vrsqrt.f32 %v383_v35  ;;  %v426_v36 = vpop.permute.xlu1 %425  ;;  %vm400_vm3 = vcmp.eq.f32.partialorder %v383_v35, inf  ;;  %v403_v50 = vand.u32 2147483648, %v383_v35  ;;  %vm402_vm5 = vcmp.eq.f32.partialorder %v383_v35, 0.0 }
 0x215   : > { %v431_v9 = vrot.slane %v426_v36, %v430_v59 }
 0x218   : > { %v444_v40 = vpop.permute.xlu1 %443 }
 0x219   : > { %v435_v61 = vpop.permute.xlu0 %434  ;;  %v449_v21 = vrot.slane %v444_v40, %v430_v59 }
 0x21a   : > { %v736_v37 = vpop.eup %735  ;;  %v440_v10 = vrot.slane %v435_v61, %v430_v59 }
 0x21b   : > { %v385_v38 = vmul.f32 %v736_v37, %v381_v31 }
 0x21c   : > { %v462_v55 = vpop.permute.xlu1 %461 }
 0x21d   : > { %v738_v41 = vpop.eup %737  ;;  %v387_v42 = vsel %vm386_vm0, %v381_v31, %v385_v38  ;;  %v467_v18 = vrot.slane %v462_v55, %v430_v59 }
 0x21e   : > { %v740_v43 = vpop.eup %739  ;;  %v392_v44 = vmul.f32 %v738_v41, %v382_v33  ;;  %v390_v46 = vsel %vm388_vm1, %v389_v39, %v387_v42 }
 0x21f   : > { %v399_v48 = vmul.f32 %v740_v43, %v383_v35  ;;  %v405_v49 = vadd.f32 1e-05, %v390_v46 }
 0x220   : > { %v394_v51 = vsel %vm393_vm2, %v382_v33, %v392_v44  ;;  %v471_v60 = vpop.permute.xlu1 %470 }
 0x221   : > { %741 = vrcp.f32 %v405_v49  ;;  %v401_v52 = vsel %vm400_vm3, %v383_v35, %v399_v48  ;;  %v397_v53 = vsel %vm395_vm4, %v396_v47, %v394_v51 }
 0x222   : > { %v404_v54 = vsel %vm402_vm5, %v403_v50, %v401_v52  ;;  %v406_v56 = vadd.f32 1e-05, %v397_v53 }
 0x223   : > { %v407_v57 = vadd.f32 1e-05, %v404_v54 }
 0x224   : > { %743 = vrcp.f32 %v406_v56  ;;  %v480_v19 = vpop.permute.xlu1 %479 }
 0x225   : > { %745 = vrcp.f32 %v407_v57  ;;  %v485_v27 = vrot.slane %v480_v19, %v430_v59 }
 0x22b   : > { %v742_v62 = vpop.eup %741 }
 0x22c   : > { %v414_v7 = vmul.f32 %v742_v62, %v1026_v63  ;;  %v415_v8 = vmul.f32 %v742_v62, %v1028_v3  ;;  %v476_v3 = vrot.slane %v471_v60, %v430_v59 }
 0x22e   : > { %v744_v11 = vpop.eup %743  ;;  %v450_v12 = vmul.f32 %v431_v9, %v414_v7  ;;  %v451_v17 = vmul.f32 %v431_v9, %v415_v8 }
 0x22f   : > { %v746_v20 = vpop.eup %745  ;;  %v416_v22 = vmul.f32 %v744_v11, %v1038_v15  ;;  %v417_v23 = vmul.f32 %v744_v11, %v1040_v16 }
 0x230   : > { %v418_v24 = vmul.f32 %v746_v20, %v1034_v13  ;;  %v419_v25 = vmul.f32 %v746_v20, %v1036_v14  ;;  %v486_v63 = vadd.f32 %v467_v18, %v450_v12  ;;  %v487_v26 = vadd.f32 %v467_v18, %v451_v17 }
 0x231   : > { %v452_v28 = vmul.f32 %v440_v10, %v416_v22  ;;  %v453_v29 = vmul.f32 %v440_v10, %v417_v23 }
 0x232   : > { %v454_v30 = vmul.f32 %v449_v21, %v418_v24  ;;  %v455_v31 = vmul.f32 %v449_v21, %v419_v25  ;;  %v664_v32 = vmul.f32 -1.442695, %v486_v63  ;;  %v665_v33 = vmul.f32 -1.442695, %v487_v26 }
 0x233   : > { %v488_v34 = vadd.f32 %v476_v3, %v452_v28  ;;  %v489_v35 = vadd.f32 %v476_v3, %v453_v29 }
 0x234   : > { %747 = vpow2.f32 %v664_v32  ;;  %v490_v15 = vadd.f32 %v485_v27, %v454_v30  ;;  %v491_v36 = vadd.f32 %v485_v27, %v455_v31 }
 0x235   : > { %749 = vpow2.f32 %v665_v33  ;;  %v666_v16 = vmul.f32 -1.442695, %v488_v34  ;;  %v667_v14 = vmul.f32 -1.442695, %v489_v35 }
 0x236   : > { %v668_v13 = vmul.f32 -1.442695, %v490_v15  ;;  %v669_v37 = vmul.f32 -1.442695, %v491_v36 }
 0x237   : > { %751 = vpow2.f32 %v666_v16 }
 0x238   : > { %753 = vpow2.f32 %v668_v13 }
 0x239   : > { %755 = vpow2.f32 %v669_v37 }
 0x23a   : > { %757 = vpow2.f32 %v667_v14 }
 0x23e   : > { %v748_v38 = vpop.eup %747 }
 0x23f   : > { %v750_v39 = vpop.eup %749  ;;  %v510_v40 = vadd.f32 1.0, %v748_v38 }
 0x240   : > { %v511_v41 = vadd.f32 1.0, %v750_v39 }
 0x241   : > { %v752_v42 = vpop.eup %751  ;;  %759 = vrcp.f32 %v510_v40 }
 0x242   : > { %v754_v43 = vpop.eup %753  ;;  %761 = vrcp.f32 %v511_v41  ;;  %v512_v44 = vadd.f32 1.0, %v752_v42 }
 0x243   : > { %v756_v45 = vpop.eup %755  ;;  %v514_v46 = vadd.f32 1.0, %v754_v43 }
 0x244   : > { %v758_v47 = vpop.eup %757  ;;  %v515_v48 = vadd.f32 1.0, %v756_v45  ;;  %763 = vrcp.f32 %v512_v44 }
 0x245   : > { %765 = vrcp.f32 %v514_v46  ;;  %v513_v49 = vadd.f32 1.0, %v758_v47 }
 0x246   : > { %767 = vrcp.f32 %v515_v48 }
 0x247   : > { %769 = vrcp.f32 %v513_v49 }
 0x24b   : > { %v760_v50 = vpop.eup %759 }
 0x24c   : > { %v762_v51 = vpop.eup %761  ;;  %v528_v52 = vmul.f32 %v760_v50, %v1006_v2 }
 0x24d   : > { %v529_v53 = vmul.f32 %v762_v51, %v1010_v4 }
 0x24e   : > { %v764_v54 = vpop.eup %763  ;;  %534 = vst [vmem:[%s248_s27] sm:$0xff] %v528_v52  ;;  %547 = sbr.rel (!%p938_p9) target bundleno = 625 (0x271), region = 40 }
 0x24f   : > { %v766_v55 = vpop.eup %765  ;;  %535 = vst [vmem:[%s248_s27 + $0x8] sm:$0xff] %v529_v53  ;;  %v530_v56 = vmul.f32 %v764_v54, %v1012_v5 }
 0x250   : > { %v768_v57 = vpop.eup %767  ;;  %v532_v58 = vmul.f32 %v766_v55, %v1002_v0 }
 0x251   : > { %v770_v59 = vpop.eup %769  ;;  %v533_v60 = vmul.f32 %v768_v57, %v1004_v1  ;;  %536 = vst [vmem:[%s248_s27 + $0x10] sm:$0xff] %v530_v56 }
 0x252   : > { %538 = vst [vmem:[%s248_s27 + $0x20] sm:$0xff] %v532_v58  ;;  %v531_v2 = vmul.f32 %v770_v59, %v1014_v6 }
 0x253   : > { %539 = vst [vmem:[%s248_s27 + $0x28] sm:$0xff] %v533_v60 }
 0x254   : > { %537 = vst [vmem:[%s248_s27 + $0x18] sm:$0xff] %v531_v2 }
 0x255   : > { %s1151_s30 = smov (!%p550_p10, %s549_s30), 3 }
 0x256   : > { %s1079_s5 = sshll.u32 %s1151_s30, 8 }
 0x257   : > { %s555_s6 = ssub.s32 768, %s1079_s5 }
 0x258   : > { %556 = vsyncadd %s541_s28, %s555_s6  ;;  %p672_p13 = scmp.ne.s32.totalorder %s1079_s5, 0  ;;  %s686_s8 = smul.u32 768, %s915_s16 }
 0x259   : > { %s562_s11 = sshll.u32 %s248_s27, 4  ;;  %s871_s29 = smov [#allocation5]   ;;  %s1091_s11 = int_to_ptr.vmem [resolvable:$true] %s562_s11 }
 0x25a   : > { %s1089_s19 = scalar_lea.hbm %s1139_s3, %s686_s8  ;;  %s799_s22 = scalar_lea.vmem %s1091_s11, %s1079_s5 }
 0x25b   : > { %p800_p9 = scmp.ne.s32.totalorder %s1091_s11, %s799_s22  ;;  %s803_s4 = sshll.u32 %s871_s29, 4  ;;  %s804_s4 = int_to_ptr.vmem [resolvable:$false] %s803_s4 }
 0x25c   : > { %s805_s16 = scalar_lea.vmem %s804_s4, 1536  ;;  %p806_p0 = scmp.lt.s32.totalorder %s1091_s11, %s804_s4 }
 0x25d   : > { %p801_p11 = pnand %p800_p9, %p672_p13  ;;  %p807_p1 = scmp.lt.s32.totalorder %s805_s16, %s799_s22 }
 0x25f   : > { %p802_p12 = pneg %p801_p11  ;;  %p808_p3 = por %p807_p1, %p806_p0 }
 0x261   : > { %p809_p4 = pnand %p808_p3, %p802_p12 }
 0x263   : > { %812 = shalt.err (!%p809_p4)
}
 0x264   : > { %s813_s7 = scalar_lea.hbm %s1089_s19, %s1079_s5  ;;  %s817_s25 = scalar_lea.hbm %s1139_s3, 5120 }
 0x265   : > { %p814_p5 = scmp.ne.s32.totalorder %s1089_s19, %s813_s7  ;;  %p818_p8 = scmp.lt.u32.totalorder %s1089_s19, %s1139_s3 }
 0x266   : > { %p819_p6 = scmp.lt.u32.totalorder %s817_s25, %s813_s7  ;;  %p821_p9 = scmp.lt.u32.totalorder %s813_s7, %s1089_s19 }
 0x267   : > { %p815_p2 = pnand %p814_p5, %p672_p13 }
 0x268   : > { %p820_p10 = por %p819_p6, %p818_p8 }
 0x269   : > { %p816_p7 = pneg %p815_p2 }
 0x26a   : > { %p822_p11 = por %p821_p9, %p820_p10 }
 0x26c   : > { %p823_p12 = pnand %p822_p11, %p816_p7 }
 0x26e   : > { %826 = shalt.err (!%p823_p12)
}
 0x26f   : > { %s872_s30 = smov 256   ;;  %s873_s6 = smov 16  }
 0x270   : > { %568 = dma.vmem_to_hbm [thread:$0]  (%p672_p13), %s1091_s11, %s1079_s5, %s1089_s19, %s541_s28, %s872_s30, %s872_s30, %s873_s6  }
 0x271 PF: > { %p695_p0 = scmp.ge.s32.totalorder %s865_s15, 2  ;;  %s577_s8 = sand.u32 1, %s853_s12  }
 0x272   : > { %p1143_p1 = scmp.ne.s32.totalorder %s1142_s24, 0  ;;  %s578_s23 = scalar_lea.sflag [#allocation4], %s577_s8 }
 0x274   : > { %p692_p3 = pnand %p695_p0, %p1143_p1 }
 0x276   : > { %848 = dma.done.wait (!%p692_p3), %s578_s23, 768  }
 0x277   : > { %850 = vsyncadd (!%p692_p3), %s578_s23, 4294966528  ;;  %p16_p4 = scmp.ge.s32.totalorder %s919_s18, 9   ;;  %s1144_s12 = smov %s857_s13 }
 0x278   : > { %s1145_s13 = smov %s861_s14  ;;  %s1146_s14 = smov %s931_s21 }
 0x279   : > { %s1147_s15 = smov %s919_s18  ;;  %18 = sbr.rel (!%p16_p4) target bundleno = 5 (0x5), region = 83 }
 0x280   :  { %583 = vsyncpa [#allocation3], 1 }
 0x281   :  { %585 = vsyncpa [#allocation3 + $0x1], 1 }
 0x282   :  { %586 = vsyncpa [#allocation4], 1 }
 0x283   :  { %588 = vsyncpa [#allocation4 + $0x1], 1 }

</bundles_post_ra>
